<compile_context>
chip_gen: v5e
topology: v5e:2x2
jax: 0.10.0
libtpu: 0.0.40
codegen_flags: <defaults>
</compile_context>

<pallas_src>
import jax
import jax.numpy as jnp
from jax.experimental import pallas as pl
from jax.experimental.pallas import tpu as pltpu


def _head_kernel(x_ref, w_ref, b_ref, o_ref):
    # x_ref: [TILE_BS, feat]      activations (last patch already selected)
    # w_ref: [n_classes, feat]    PyTorch nn.Linear weight layout, VMEM-resident
    # b_ref: [1, n_classes]       f32, VMEM-resident
    # o_ref: [TILE_BS, n_classes] f32
    acc = jax.lax.dot_general(
        x_ref[...], w_ref[...],
        dimension_numbers=(((1,), (1,)), ((), ())),   # x @ W.T on the MXU
        preferred_element_type=jnp.float32)
    o_ref[...] = (acc + b_ref[...].astype(jnp.float32)).astype(o_ref.dtype)


def _vmem_capacity_bytes(default=64 * 1024 * 1024):
    """Physical VMEM per core; conservative (v7x-sized) fallback."""
    try:
        info = pltpu.get_tpu_info()
    except Exception:
        return default
    for name in ("vmem_capacity_bytes", "vmem_bytes", "vmem_size_bytes"):
        v = getattr(info, name, None)
        if isinstance(v, int) and v > 0:
            return v
    return default


def _pick_tiling(bs, feat, x_itemsize, n_classes, w_itemsize):
    """Choose (tile_bs, vmem_limit_bytes).

    Budget math covers every VMEM buffer the pipeline allocates:
      - double-buffered x slab:        2 * tile_bs * feat * x_itemsize
      - double-buffered, lane-padded output slab: 2 * tile_bs * 128 * 4
      - VMEM-resident W (double-buffered, sublane-padded) and bias.
    """
    vmem = _vmem_capacity_bytes()
    budget = int(vmem * 0.70)        # kernel buffers (headroom for internal scratch)
    vmem_limit = int(vmem * 0.75)    # scoped limit handed to Mosaic

    out_lanes = max(128, ((n_classes + 127) // 128) * 128)
    n_cls_sub = ((n_classes + 7) // 8) * 8
    fixed = (2 * n_cls_sub * feat * w_itemsize      # resident weight (2 bufs)
             + 2 * 8 * out_lanes * 4)               # resident bias (2 bufs, padded)
    per_row = 2 * feat * x_itemsize + 2 * out_lanes * 4

    vmem_rows = max(16, (budget - fixed) // per_row)
    tile = min(bs, vmem_rows)

    # Megacore (v7x): keep >= 2 grid steps when each half-step still moves
    # >= ~2 MiB of x, so per-step overhead stays amortized on every generation.
    half16 = ((-(-bs // 2) + 15) // 16) * 16
    if half16 < bs and half16 * feat * x_itemsize >= 2 * 1024 * 1024:
        tile = min(tile, half16)

    if tile < bs:
        tile = max(16, (tile // 16) * 16)   # sublane-friendly for f32 and bf16
        tile = min(tile, bs)
    return tile, vmem_limit


def classification_head_forward(x, weight, bias, *, head_dropout=0.0):
    """PatchTST ClassificationHead forward.

    x:      [bs, n_vars, d_model, num_patch]
    weight: [n_classes, n_vars * d_model]   (PyTorch nn.Linear layout)
    bias:   [n_classes]
    Returns float32 [bs, n_classes] (or [bs] if n_classes == 1, like .squeeze(-1)).

    Pass bf16 x/weight straight from upstream when available; do not cast here.
    """
    bs, n_vars, d_model, num_patch = x.shape
    n_classes, feat = weight.shape
    assert feat == n_vars * d_model

    # Last-patch gather + flatten.  allow_input_fusion below lets XLA fuse this
    # producer into the kernel's input reads instead of materializing x_flat.
    x_flat = x[:, :, :, -1].reshape(bs, feat)

    # Dropout is identity at inference time.
    # TODO(synk): training-mode dropout (pltpu.prng_*) not implemented; eval only.
    del head_dropout

    b2d = bias.reshape(1, n_classes).astype(jnp.float32)

    tile_bs, vmem_limit = _pick_tiling(
        bs, feat, x_flat.dtype.itemsize, n_classes, weight.dtype.itemsize)
    grid = (pl.cdiv(bs, tile_bs),)

    cost = pl.CostEstimate(
        flops=2 * bs * feat * n_classes,
        transcendentals=0,
        bytes_accessed=(bs * feat * x_flat.dtype.itemsize
                        + n_classes * feat * weight.dtype.itemsize
                        + bs * n_classes * 4))

    y = pl.pallas_call(
        _head_kernel,
        out_shape=jax.ShapeDtypeStruct((bs, n_classes), jnp.float32),
        grid=grid,
        in_specs=[
            pl.BlockSpec((tile_bs, feat), lambda i: (i, 0)),     # streamed x
            pl.BlockSpec((n_classes, feat), lambda i: (0, 0)),   # resident W
            pl.BlockSpec((1, n_classes), lambda i: (0, 0)),      # resident b
        ],
        out_specs=pl.BlockSpec((tile_bs, n_classes), lambda i: (i, 0)),
        compiler_params=pltpu.CompilerParams(
            dimension_semantics=("parallel",),
            vmem_limit_bytes=vmem_limit,
            # Fuse the last-patch slice/reshape producer into the kernel's
            # x reads (hint only; XLA falls back gracefully if unsupported).
            allow_input_fusion=[True, False, False]),
        cost_estimate=cost,
    )(x_flat, weight, b2d)

    if n_classes == 1:
        y = y[:, 0]   # torch .squeeze(-1)
    return y


if __name__ == "__main__":
    # Small shapes consistent with the module's forward.
    bs, n_vars, d_model, num_patch = 2, 4, 32, 8
    n_classes = 5
    feat = n_vars * d_model

    key = jax.random.PRNGKey(0)
    kx, kw, kb = jax.random.split(key, 3)

    x_f32 = jax.random.normal(kx, (bs, n_vars, d_model, num_patch), jnp.float32)
    # Deterministic nn.Linear-style init: U(-1/sqrt(fan_in), 1/sqrt(fan_in))
    bound = 1.0 / (feat ** 0.5)
    w_f32 = jax.random.uniform(kw, (n_classes, feat), jnp.float32, -bound, bound)
    b_f32 = jax.random.uniform(kb, (n_classes,), jnp.float32, -bound, bound)

    # --- bf16 activations / weight (halves HBM traffic; f32 accumulation) ----
    x_bf = x_f32.astype(jnp.bfloat16)
    w_bf = w_f32.astype(jnp.bfloat16)
    y16 = jax.block_until_ready(classification_head_forward(x_bf, w_bf, b_f32))
    ref16 = (jnp.dot(x_bf[:, :, :, -1].reshape(bs, feat), w_bf.T,
                     preferred_element_type=jnp.float32) + b_f32)
    assert y16.shape == (bs, n_classes)
    assert y16.dtype == jnp.float32
    assert jnp.allclose(y16, ref16, atol=1e-3, rtol=1e-3), \
        float(jnp.max(jnp.abs(y16 - ref16)))

    # --- f32 path (loose tolerance: MXU f32-decomposition precision may differ
    #     from the XLA reference's default matmul precision) -------------------
    y32 = jax.block_until_ready(classification_head_forward(x_f32, w_f32, b_f32))
    ref32 = x_f32[:, :, :, -1].reshape(bs, feat) @ w_f32.T + b_f32
    assert y32.shape == (bs, n_classes)
    assert jnp.allclose(y32, ref32, atol=5e-2, rtol=1e-2), \
        float(jnp.max(jnp.abs(y32 - ref32)))

    print("KERNEL_OK")
</pallas_src>

<mosaic_0001>
module attributes {stable_mosaic.version = 11 : i64} {
  func.func @_head_kernel(%arg0: i32, %arg1: memref<2x128xbf16, #tpu.memory_space<vmem>>, %arg2: memref<5x128xbf16, #tpu.memory_space<vmem>>, %arg3: memref<1x5xf32, #tpu.memory_space<vmem>>, %arg4: memref<2x5xf32, #tpu.memory_space<vmem>>) attributes {dimension_semantics = [#tpu.dimension_semantics<parallel>], iteration_bounds = array<i64: 1>, scalar_prefetch = 0 : i64, scratch_operands = 0 : i64, tpu.core_type = #tpu.core_type<tc>, window_params = [{transform_indices = @transform_0, window_bounds = array<i64: 2, 128>}, {pipeline_mode = #tpu.pipeline_mode<synchronous>, transform_indices = @transform_1, window_bounds = array<i64: 5, 128>}, {pipeline_mode = #tpu.pipeline_mode<synchronous>, transform_indices = @transform_2, window_bounds = array<i64: 1, 5>}, {transform_indices = @transform_3, window_bounds = array<i64: 2, 5>}]} {
    %c0 = arith.constant 0 : index
    %c0_0 = arith.constant 0 : index
    %0 = vector.load %arg1[%c0, %c0_0] : memref<2x128xbf16, #tpu.memory_space<vmem>>, vector<2x128xbf16>
    %c0_1 = arith.constant 0 : index
    %c0_2 = arith.constant 0 : index
    %1 = vector.load %arg2[%c0_1, %c0_2] : memref<5x128xbf16, #tpu.memory_space<vmem>>, vector<5x128xbf16>
    %cst = arith.constant dense<0.000000e+00> : vector<2x5xf32>
    %2 = tpu.matmul %0, %1, %cst {dimension_numbers = #tpu.dot_dimension_numbers<[1], [1], [0], [0], [0, 0, 1, 0], [], []>} : vector<2x128xbf16>, vector<5x128xbf16>, vector<2x5xf32> -> vector<2x5xf32>
    %c0_3 = arith.constant 0 : index
    %c0_4 = arith.constant 0 : index
    %3 = vector.load %arg3[%c0_3, %c0_4] : memref<1x5xf32, #tpu.memory_space<vmem>>, vector<1x5xf32>
    %4 = vector.broadcast %3 : vector<1x5xf32> to vector<2x5xf32>
    %5 = arith.addf %2, %4 : vector<2x5xf32>
    %c0_5 = arith.constant 0 : index
    %c0_6 = arith.constant 0 : index
    %6 = vector.load %arg4[%c0_5, %c0_6] : memref<2x5xf32, #tpu.memory_space<vmem>>, vector<2x5xf32>
    tpu.vector_store %arg4[%c0_5, %c0_6], %5 {strides = array<i32>} : memref<2x5xf32, #tpu.memory_space<vmem>>, vector<2x5xf32>,
    return
  }
  func.func @transform_0(%arg0: i32) -> (i32, i32) {
    %c0_i32 = arith.constant 0 : i32
    %c0_i32_0 = arith.constant 0 : i32
    return %arg0, %c0_i32 : i32, i32
  }
  func.func @transform_1(%arg0: i32) -> (i32, i32) {
    %c0_i32 = arith.constant 0 : i32
    %c0_i32_0 = arith.constant 0 : i32
    %c0_i32_1 = arith.constant 0 : i32
    return %c0_i32, %c0_i32_0 : i32, i32
  }
  func.func @transform_2(%arg0: i32) -> (i32, i32) {
    %c0_i32 = arith.constant 0 : i32
    %c0_i32_0 = arith.constant 0 : i32
    %c0_i32_1 = arith.constant 0 : i32
    return %c0_i32, %c0_i32_0 : i32, i32
  }
  func.func @transform_3(%arg0: i32) -> (i32, i32) {
    %c0_i32 = arith.constant 0 : i32
    %c0_i32_0 = arith.constant 0 : i32
    return %arg0, %c0_i32 : i32, i32
  }
}

</mosaic_0001>

<bundles_post_ra>
// kernel: tpu_custom_call.1
= control target key start
LH: loop header
LB: loop body
LE: loop exit
PB: predicated region body
PF: predicated region fallthrough
CT: control target
= control target key end

     0   :  { %8 = vsyncpa [#allocation3], 0  ;;  %s200_s0 = inlined_call_operand.hbm [shape: bf16[2,128], index: 0, kind: input, shape index: {}]   ;;  %s201_s1 = inlined_call_operand.hbm [shape: bf16[5,128], index: 1, kind: input, shape index: {}]   ;;  %s202_s2 = inlined_call_operand.vmem [shape: f32[1,5], index: 2, kind: input, shape index: {}]   ;;  %s203_s3 = inlined_call_operand.hbm [shape: f32[2,5], index: 3, kind: output, shape index: {}]  }
   0x1   :  { %9 = vsyncpa [#allocation6], 0 }
   0x2   :  { %10 = vsyncpa [#allocation4], 0  ;;  %s16_s14 = sshll.u32 %s200_s0, 4  ;;  %s165_s15 = smov [#allocation2]   ;;  %s17_s14 = int_to_ptr.hbm [resolvable:$true] %s16_s14 }
   0x3   :  { %s18_s16 = sshll.u32 %s165_s15, 4  ;;  %s27_s19 = sshll.u32 %s201_s1, 4  ;;  %s19_s16 = int_to_ptr.vmem [resolvable:$true] %s18_s16  ;;  %s28_s19 = int_to_ptr.hbm [resolvable:$true] %s27_s19 }
   0x4   :  { %21 = dma.hbm_to_vmem [thread:$0]  %s17_s14, 16, %s19_s16, [#allocation3]  }
   0x5   :  { %s166_s20 = smov [#allocation5]  }
   0x6   :  { %s29_s21 = sshll.u32 %s166_s20, 4  ;;  %s30_s21 = int_to_ptr.vmem [resolvable:$true] %s29_s21 }
   0x7   :  { %32 = dma.hbm_to_vmem [thread:$0]  %s28_s19, 64, %s30_s21, [#allocation6]  }
   0x8   :  { %159 = dma.done.wait [#allocation3], 16  }
   0x9   :  { %160 = vsyncadd [#allocation3], 4294967280 }
   0xa   :  { %161 = dma.done.wait [#allocation6], 64  }
   0xb   :  { %162 = vsyncadd [#allocation6], 4294967232  ;;  %v45_v0 = vld [vmem:[#allocation5] sm:$0x7]  ;;  %v44_v1 = vld [vmem:[#allocation2] sm:$0x1] }
   0xc   :  { %57 = vmatpush.bf16.xpose.msra.mxu0 %v45_v0  ;;  %v86_v2 = vld [vmem:[%s202_s2] ss:$0 sm:$0xff]  ;;  %s167_s23 = smov [#allocation7]   ;;  %s72_s26 = sshll.u32 %s203_s3, 4  ;;  %vm63_vm0 = vcmask 33792   ;;  %s73_s26 = int_to_ptr.hbm [resolvable:$true] %s72_s26 }
   0xd   :  { %s70_s1 = sshll.u32 %s167_s23, 4  ;;  %s71_s1 = int_to_ptr.vmem [resolvable:$true] %s70_s1 }
  0x13   :  { %58 = vmatmul.bf16.vlgmr.msra.gmra.mxu0 %v44_v1 }
  0x90   :  { %v59_v3 = vpop.f32.mrf.mxu0 }
  0x91   :  { %v60_v4 = vadd.f32 %v86_v2, %v59_v3 }
  0x93   :  { %64 = vst.msk [vmem:[#allocation7] sm:$0x3] %vm63_vm0, %v60_v4 }
  0x94   :  { %75 = dma.vmem_to_hbm [thread:$0]  %s71_s1, 32, %s73_s26, [#allocation4]  }
  0x98   :  { %v61_v5 = vpop.f32.mrf.mxu0 }
  0x99   :  { %163 = dma.done.wait [#allocation4], 32  }
  0x9a   :  { %164 = vsyncadd [#allocation4], 4294967264 }
  0x9b   :  { %80 = vsyncpa [#allocation3], 1 }
  0x9c   :  { %81 = vsyncpa [#allocation6], 1 }
  0x9d   :  { %82 = vsyncpa [#allocation4], 1 }

</bundles_post_ra>
